<compile_context>
chip_gen: v5e
topology: v5e:2x2
jax: 0.10.0
libtpu: 0.0.40
codegen_flags: <defaults>
</compile_context>

<pallas_src>
import jax
import jax.numpy as jnp
from jax.experimental import pallas as pl
from jax.experimental.pallas import tpu as pltpu


# --------------------------------- kernel ------------------------------------
def disparity_regression_kernel(disp_ref, x_ref, o_ref):
    """One (sample-block, lane-tile) step: out[b, p] = sum_d d * x[b, d, p]."""
    x = x_ref[...].astype(jnp.float32)        # (nb, D, TILE) f32
    w = disp_ref[...]                         # (1, D, 1) f32, resident in VMEM
    o_ref[...] = jnp.sum(x * w, axis=1, keepdims=True).astype(o_ref.dtype)


# ------------------------------ sizing helpers --------------------------------
def _divisors(n):
    divs, i = set(), 1
    while i * i <= n:
        if n % i == 0:
            divs.add(i)
            divs.add(n // i)
        i += 1
    return divs


def _vmem_budget_bytes():
    """Per-generation scoped-VMEM budget for this kernel's blocks + temps."""
    cap = 64 << 20  # conservative fallback: v7x per-TC VMEM
    try:
        info = pltpu.get_tpu_info()
        cap = int(getattr(info, "vmem_capacity_bytes", cap))
    except Exception:
        pass
    # Leave >=16 MiB headroom for compiler temporaries; cap at 64 MiB even on
    # 128 MiB parts (v5e/v6e) — diminishing returns beyond that.
    return max(8 << 20, min(cap - (16 << 20), 64 << 20))


def _choose_blocking(n, d, hw_pad, in_itemsize, out_itemsize, budget):
    """Pick (nb samples per block, lane tile) for the padded (N, D, HW) volume.

    Per-step VMEM accounting per lane, per sample:
      * double-buffered input block            2 * D * in_itemsize
      * in-kernel f32 cast + product temps     2 * D * 4   (headroom)
      * double-buffered output block           2 * out_itemsize
    """
    per_lane = 2 * d * in_itemsize + 2 * d * 4 + 2 * out_itemsize

    lane_divs = sorted(_divisors(hw_pad // 128), reverse=True)
    tile = 128
    for dv in lane_divs:
        t = 128 * dv
        if t * per_lane <= budget:
            tile = t
            break

    # Keep >=2 grid steps (v7x megacore): if a single step covers everything,
    # split the lane axis when possible.
    if n * (hw_pad // tile) < 2:
        for dv in lane_divs:
            t = 128 * dv
            if t < hw_pad:
                tile = t
                break

    # Small-HW / large-N shapes: fuse several samples per step, but never
    # collapse the whole grid to a single step.
    nb = 1
    if tile == hw_pad:
        for cand in sorted(_divisors(n), reverse=True):
            steps = (n // cand) * (hw_pad // tile)
            if cand * tile * per_lane <= budget and (steps >= 2 or cand == 1):
                nb = cand
                break
    return nb, tile


# -------------------------------- wrapper -------------------------------------
def disparity_regression(x):
    """Pallas TPU port of `disparityregression.forward`.

    x: (N, maxdisp, H, W) float -> out: (N, H, W) (f32 for f32/bf16 inputs,
    matching PyTorch's promotion against the float32 disparity buffer).
    """
    N, D, H, W = x.shape
    HW = H * W
    out_dtype = jnp.promote_types(x.dtype, jnp.float32)
    in_itemsize = x.dtype.itemsize
    out_itemsize = jnp.dtype(out_dtype).itemsize

    # Lane-dense layout: lane axis = H*W, zero-padded to a multiple of 128.
    HW_pad = ((HW + 127) // 128) * 128
    x2 = x.reshape(N, D, HW)
    if HW_pad != HW:
        x2 = jnp.pad(x2, ((0, 0), (0, 0), (0, HW_pad - HW)))

    budget = _vmem_budget_bytes()
    nb, tile = _choose_blocking(N, D, HW_pad, in_itemsize, out_itemsize, budget)
    vmem_limit = budget + (8 << 20)   # slack for compiler metadata; < physical

    # Disparity weights, hoisted out of the per-step body (resident in VMEM).
    disp = jnp.arange(D, dtype=jnp.float32).reshape(1, D, 1)

    out = pl.pallas_call(
        disparity_regression_kernel,
        out_shape=jax.ShapeDtypeStruct((N, 1, HW_pad), out_dtype),
        grid=(N // nb, HW_pad // tile),
        in_specs=[
            pl.BlockSpec((1, D, 1), lambda n, t: (0, 0, 0)),      # resident
            pl.BlockSpec((nb, D, tile), lambda n, t: (n, 0, t)),
        ],
        out_specs=pl.BlockSpec((nb, 1, tile), lambda n, t: (n, 0, t)),
        compiler_params=pltpu.CompilerParams(
            dimension_semantics=("parallel", "parallel"),
            vmem_limit_bytes=int(vmem_limit)),
        cost_estimate=pl.CostEstimate(
            flops=2 * N * D * HW,
            transcendentals=0,
            bytes_accessed=N * D * HW * in_itemsize + N * HW * out_itemsize),
    )(disp, x2)

    return out.reshape(N, HW_pad)[:, :HW].reshape(N, H, W)


# ------------------------------ pure-JAX reference ---------------------------
def disparity_regression_ref(x):
    N, D, H, W = x.shape
    disp = jnp.arange(D, dtype=jnp.float32).reshape(1, D, 1, 1)
    return jnp.sum(x.astype(jnp.float32) * disp, axis=1)


if __name__ == "__main__":
    key = jax.random.PRNGKey(0)
    k1, k2 = jax.random.split(key)

    # Main test: softmaxed cost volume, H*W a multiple of 128.
    N, maxdisp, H, W = 2, 32, 16, 16
    x = jax.nn.softmax(jax.random.normal(k1, (N, maxdisp, H, W), jnp.float32),
                       axis=1)
    out = jax.block_until_ready(disparity_regression(x))
    ref = jax.block_until_ready(disparity_regression_ref(x))
    assert out.shape == (N, H, W) and out.dtype == jnp.float32
    assert jnp.allclose(out, ref, rtol=1e-5, atol=1e-4), (
        float(jnp.max(jnp.abs(out - ref))))

    # Odd spatial size: exercises the pad-to-128 path (H*W = 63 -> 128).
    x_odd = jax.nn.softmax(jax.random.normal(k2, (1, 16, 7, 9), jnp.float32),
                           axis=1)
    out_odd = jax.block_until_ready(disparity_regression(x_odd))
    ref_odd = jax.block_until_ready(disparity_regression_ref(x_odd))
    assert out_odd.shape == (1, 7, 9)
    assert jnp.allclose(out_odd, ref_odd, rtol=1e-5, atol=1e-4), (
        float(jnp.max(jnp.abs(out_odd - ref_odd))))

    print("KERNEL_OK")
</pallas_src>

<mosaic_0001>
module attributes {stable_mosaic.version = 11 : i64} {
  func.func @disparity_regression_kernel(%arg0: i32, %arg1: i32, %arg2: memref<1x32x1xf32, #tpu.memory_space<vmem>>, %arg3: memref<1x32x256xf32, #tpu.memory_space<vmem>>, %arg4: memref<1x1x256xf32, #tpu.memory_space<vmem>>) attributes {dimension_semantics = [#tpu.dimension_semantics<parallel>, #tpu.dimension_semantics<parallel>], iteration_bounds = array<i64: 2, 1>, scalar_prefetch = 0 : i64, scratch_operands = 0 : i64, tpu.core_type = #tpu.core_type<tc>, window_params = [{pipeline_mode = #tpu.pipeline_mode<synchronous>, transform_indices = @transform_0, window_bounds = array<i64: 1, 32, 1>}, {transform_indices = @transform_1, window_bounds = array<i64: 1, 32, 256>}, {transform_indices = @transform_2, window_bounds = array<i64: 1, 1, 256>}]} {
    %c0 = arith.constant 0 : index
    %c0_0 = arith.constant 0 : index
    %c0_1 = arith.constant 0 : index
    %0 = vector.load %arg3[%c0, %c0_0, %c0_1] : memref<1x32x256xf32, #tpu.memory_space<vmem>>, vector<1x32x256xf32>
    %c0_2 = arith.constant 0 : index
    %c0_3 = arith.constant 0 : index
    %c0_4 = arith.constant 0 : index
    %1 = vector.load %arg2[%c0_2, %c0_3, %c0_4] : memref<1x32x1xf32, #tpu.memory_space<vmem>>, vector<1x32x1xf32>
    %2 = vector.broadcast %1 : vector<1x32x1xf32> to vector<1x32x256xf32>
    %3 = arith.mulf %0, %2 : vector<1x32x256xf32>
    %cst = arith.constant dense<0.000000e+00> : vector<1x256xf32>
    %4 = vector.multi_reduction <add>, %3, %cst [1] : vector<1x32x256xf32> to vector<1x256xf32>
    %5 = vector.shape_cast %4 : vector<1x256xf32> to vector<1x1x256xf32>
    %c0_5 = arith.constant 0 : index
    %c0_6 = arith.constant 0 : index
    %c0_7 = arith.constant 0 : index
    %6 = vector.load %arg4[%c0_5, %c0_6, %c0_7] : memref<1x1x256xf32, #tpu.memory_space<vmem>>, vector<1x1x256xf32>
    tpu.vector_store %arg4[%c0_5, %c0_6, %c0_7], %5 {strides = array<i32>} : memref<1x1x256xf32, #tpu.memory_space<vmem>>, vector<1x1x256xf32>,
    return
  }
  func.func @transform_0(%arg0: i32, %arg1: i32) -> (i32, i32, i32) {
    %c0_i32 = arith.constant 0 : i32
    %c0_i32_0 = arith.constant 0 : i32
    %c0_i32_1 = arith.constant 0 : i32
    %c0_i32_2 = arith.constant 0 : i32
    return %c0_i32, %c0_i32_0, %c0_i32_1 : i32, i32, i32
  }
  func.func @transform_1(%arg0: i32, %arg1: i32) -> (i32, i32, i32) {
    %c0_i32 = arith.constant 0 : i32
    %c0_i32_0 = arith.constant 0 : i32
    return %arg0, %c0_i32, %arg1 : i32, i32, i32
  }
  func.func @transform_2(%arg0: i32, %arg1: i32) -> (i32, i32, i32) {
    %c0_i32 = arith.constant 0 : i32
    %c0_i32_0 = arith.constant 0 : i32
    return %arg0, %c0_i32, %arg1 : i32, i32, i32
  }
}

</mosaic_0001>

<bundles_post_ra>
// kernel: tpu_custom_call.1
= control target key start
LH: loop header
LB: loop body
LE: loop exit
PB: predicated region body
PF: predicated region fallthrough
CT: control target
= control target key end

     0   :  { %7 = vsyncpa [#allocation3], 0  ;;  %s701_s0 = inlined_call_operand.vmem [shape: f32[1,32,1], index: 0, kind: input, shape index: {}]   ;;  %s702_s1 = inlined_call_operand.hbm [shape: f32[2,32,256], index: 1, kind: input, shape index: {}]   ;;  %s703_s2 = inlined_call_operand.hbm [shape: f32[2,1,256], index: 2, kind: output, shape index: {}]  }
   0x1   :  { %9 = vsyncpa [#allocation3 + $0x1], 0 }
   0x2   :  { %10 = vsyncpa [#allocation4], 0 }
   0x3   :  { %12 = vsyncpa [#allocation4 + $0x1], 0  ;;  %s568_s9 = smov 0   ;;  %s570_s10 = smov 0  }
   0x4   :  { %s572_s11 = smov 0   ;;  %s574_s12 = smov 0  }
   0x5   :  { %s576_s13 = smov 0   ;;  %s578_s14 = smov 0  }
   0x6 LB: > { %s354_s15 = sadd.s32 4294967295, %s548_s14   ;;  %s355_s16 = sadd.s32 4294967294, %s548_s14   ;;  %s548_s14 = sphi %s578_s14, %s18_s14   ;;  %s544_s13 = sphi %s576_s13, %s712_s13   ;;  %s540_s12 = sphi %s574_s12, %s711_s12   ;;  %s536_s11 = sphi %s572_s11, %s710_s11   ;;  %s532_s10 = sphi %s570_s10, %s709_s10   ;;  %s528_s9 = sphi %s568_s9, %s708_s9  }
   0x7   : > { %s30_s17 = sadd.s32 1, %s544_s13  ;;  %s60_s18 = sadd.s32 1, %s536_s11 }
   0x8   : > { %p32_p0 = scmp.ge.s32.totalorder %s30_s17, 2  ;;  %p67_p1 = scmp.ne.s32.totalorder %s536_s11, %s532_s10 }
   0x9   : > { %p68_p2 = scmp.eq.s32.totalorder %s548_s14, 0  ;;  %p73_p3 = scmp.ne.s32.totalorder %s532_s10, %s528_s9 }
   0xa   : > { %s714_s17 = smov (%p32_p0, %s30_s17), 0  ;;  %p74_p5 = scmp.eq.s32.totalorder %s354_s15, 0 }
   0xb   : > { %p609_p4 = por %p68_p2, %p67_p1  ;;  %s55_s20 = ssub.s32 %s544_s13, %s714_s17 }
   0xc   : > { %p99_p6 = scmp.eq.s32.totalorder %s354_s15, 1  ;;  %p58_p7 = scmp.eq.s32.totalorder %s55_s20, 0 }
   0xd   : > { %p615_p8 = por %p74_p5, %p73_p3  ;;  %p105_p10 = scmp.eq.s32.totalorder %s355_s16, 1 }
   0xe   : > { %p619_p9 = por %p99_p6, %p67_p1  ;;  %p357_p12 = scmp.ge.s32.totalorder %s548_s14, 2 }
   0xf   : > { %s624_s23 = scalar_select %p58_p7, %s536_s11, %s60_s18  }
  0x10   : > { %p626_p11 = por %p105_p10, %p73_p3  ;;  %p381_p13 = scmp.lt.s32.totalorder %s548_s14, 2 }
  0x11   : > { %s128_s25 = sand.u32 1, %s536_s11   ;;  %s368_s27 = sshll.u32 %s544_s13, 6 }
  0x12   : > { %s358_s26 = sshll.u32 %s128_s25, 6  ;;  %s139_s30 = scalar_lea.hbm %s702_s1, %s368_s27 }
  0x13   : > { %s132_s3 = scalar_lea.vmem [#allocation2], %s358_s26  ;;  %s140_s5 = sshll.u32 %s139_s30, 4  ;;  %s141_s5 = int_to_ptr.hbm [resolvable:$true] %s140_s5 }
  0x14   : > { %s142_s4 = sshll.u32 %s132_s3, 4  ;;  %p374_p0 = pnand %p381_p13, %p609_p4  ;;  %s143_s4 = int_to_ptr.vmem [resolvable:$true] %s142_s4 }
  0x15   : > { %p361_p1 = scmp.ge.s32.totalorder %s548_s14, 1  ;;  %s129_s6 = scalar_lea.sflag [#allocation3], %s128_s25 }
  0x16   : > { %s550_s7 = smov 256   ;;  %s551_s8 = smov 16  }
  0x17   : > { %376 = dma.hbm_to_vmem [thread:$0]  (!%p374_p0), %s141_s5, 1024, %s143_s4, %s129_s6, %s550_s7, %s550_s7, %s551_s8  }
  0x18   : > { %p150_p2 = scmp.lt.s32.totalorder %s548_s14, 3 }
  0x1a   : > { %p151_p3 = pnand %p361_p1, %p150_p2 }
  0x1b   : > { %s642_s15 = sand.u32 (!%p151_p3), 1, %s532_s10  }
  0x1c   : > { %154 = sbr.rel (%p151_p3) target bundleno = 185 (0xb9), region = 28  ;;  %s362_s16 = sshll.u32 (!%p151_p3), %s642_s15, 6 }
  0x1d   : > { %s157_s18 = scalar_lea.sflag (!%p151_p3), [#allocation3], %s642_s15  ;;  %s160_s20 = scalar_lea.vmem (!%p151_p3), [#allocation2], %s362_s16 }
  0x21   : > { %519 = dma.done.wait (%p615_p8), %s157_s18, 1024  }
  0x22   : > { %521 = vsyncadd (%p615_p8), %s157_s18, 4294966272  ;;  %v552_v0 = vmov 0   ;;  %v194_v1 = vld [vmem:[%s701_s0 + $0x10] sm:$0xff]  ;;  %v192_v2 = vld [vmem:[%s701_s0] sm:$0xff]  ;;  %s363_s3 = sshll.u32 %s642_s15, 1  ;;  %s365_s4 = sshll.u32 %s540_s12, 1  ;;  %v248_v41 = vlaneseq }
  0x23   : > { %435 = vset.pattern.permute.xlu1 %v552_v0  ;;  %434 = vset.pattern.permute.xlu0 %v552_v0  ;;  %v195_v3 = vld [vmem:[%s701_s0 + $0x18] sm:$0xff]  ;;  %v193_v4 = vld [vmem:[%s701_s0 + $0x8] sm:$0xff]  ;;  %v184_v7 = vld [vmem:[%s160_s20] sm:$0xff]  ;;  %s266_s7 = scalar_lea.hbm %s703_s2, %s365_s4  ;;  %s181_s8 = scalar_lea.vmem [#allocation5], %s363_s3  ;;  %vm245_vm0 = vcmask 1040384  }
  0x24   : > { %208 = vperm.xlu1 %435, %v194_v1   ;;  %198 = vperm.xlu0 %434, %v192_v2   ;;  %v185_v8 = vld [vmem:[%s160_s20 + $0x8] sm:$0xff]  ;;  %v186_v9 = vld [vmem:[%s160_s20 + $0x10] sm:$0xff]  ;;  %v187_v10 = vld [vmem:[%s160_s20 + $0x18] sm:$0xff]  ;;  %s268_s16 = sshll.u32 %s181_s8, 4  ;;  %s270_s18 = sshll.u32 %s266_s7, 4  ;;  %vm250_vm1 = vcmp.lt.s32.totalorder %v248_v41, 256  ;;  %s269_s16 = int_to_ptr.vmem [resolvable:$true] %s268_s16  ;;  %s271_s18 = int_to_ptr.hbm [resolvable:$true] %s270_s18 }
  0x25   : > { %v188_v11 = vld [vmem:[%s160_s20 + $0x20] sm:$0xff]  ;;  %v189_v12 = vld [vmem:[%s160_s20 + $0x28] sm:$0xff]  ;;  %v190_v19 = vld [vmem:[%s160_s20 + $0x30] sm:$0xff]  ;;  %s254_s12 = scalar_lea.sflag [#allocation4], %s642_s15  ;;  %s486_s27 = scalar_lea.hbm %s703_s2, 4 }
  0x26   : > { %v191_v20 = vld [vmem:[%s160_s20 + $0x38] sm:$0xff]  ;;  %s480_s20 = sshra.s32 %s271_s18, 4  ;;  %s481_s20 = int_to_ptr.hbm [resolvable:$true] %s480_s20 }
  0x27   : > { %s482_s19 = scalar_lea.hbm %s481_s20, 2  ;;  %p487_p7 = scmp.lt.s32.totalorder %s481_s20, %s703_s2 }
  0x28   : > { %p483_p4 = scmp.ne.s32.totalorder %s481_s20, %s482_s19  ;;  %p488_p8 = scmp.lt.s32.totalorder %s486_s27, %s482_s19 }
  0x2a   : > { %p484_p5 = pnand %p483_p4, %p619_p9  ;;  %p489_p10 = por %p488_p8, %p487_p7 }
  0x2c   : > { %213 = vperm.xlu1 %435, %v195_v3   ;;  %203 = vperm.xlu0 %434, %v193_v4   ;;  %p485_p6 = pneg %p484_p5 }
  0x2e   : > { %p490_p13 = pnand %p489_p10, %p485_p6 }
  0x96   : > { %v209_v5 = vpop.permute.xlu1 %208  ;;  %v199_v6 = vpop.permute.xlu0 %198 }
  0x97   : > { %v216_v14 = vmul.f32 %v199_v6, %v184_v7  ;;  %v217_v15 = vmul.f32 %v199_v6, %v185_v8  ;;  %v220_v21 = vmul.f32 %v209_v5, %v188_v11  ;;  %v221_v22 = vmul.f32 %v209_v5, %v189_v12 }
  0x9e   : > { %v204_v13 = vpop.permute.xlu0 %203  ;;  %v214_v18 = vpop.permute.xlu1 %213 }
  0x9f   : > { %v218_v16 = vmul.f32 %v204_v13, %v186_v9  ;;  %v219_v17 = vmul.f32 %v204_v13, %v187_v10  ;;  %v222_v25 = vmul.f32 %v214_v18, %v190_v19  ;;  %v223_v26 = vmul.f32 %v214_v18, %v191_v20 }
  0xa1   : > { %v224_v23 = vadd.f32 %v218_v16, %v216_v14  ;;  %v233_v24 = vadd.f32 %v219_v17, %v217_v15 }
  0xa3   : > { %v225_v27 = vadd.f32 %v224_v23, %v220_v21  ;;  %v234_v28 = vadd.f32 %v233_v24, %v221_v22 }
  0xa5   : > { %v226_v29 = vadd.f32 %v225_v27, %v222_v25  ;;  %v235_v30 = vadd.f32 %v234_v28, %v223_v26 }
  0xa7   : > { %v227_v31 = vrot.slane %v226_v29, 4  ;;  %v236_v32 = vrot.slane %v235_v30, 4 }
  0xa9   : > { %v228_v33 = vadd.f32 %v227_v31, %v226_v29  ;;  %v237_v34 = vadd.f32 %v236_v32, %v235_v30 }
  0xab   : > { %v229_v35 = vrot.slane %v228_v33, 2  ;;  %v238_v36 = vrot.slane %v237_v34, 2 }
  0xad   : > { %v230_v37 = vadd.f32 %v229_v35, %v228_v33  ;;  %v239_v38 = vadd.f32 %v238_v36, %v237_v34 }
  0xaf   : > { %v231_v39 = vrot.slane %v230_v37, 1  ;;  %v240_v40 = vrot.slane %v239_v38, 1 }
  0xb1   : > { %v241_v42 = vadd.f32 %v240_v40, %v239_v38  ;;  %v232_v43 = vadd.f32 %v231_v39, %v230_v37 }
  0xb3   : > { %v244_v44 = vrot.slane %v241_v42, 7 }
  0xb5   : > { %v246_v45 = vsel %vm245_vm0, %v232_v43, %v244_v44 }
  0xb6   : > { %252 = vst.msk [vmem:[%s181_s8] sm:$0x3] %vm250_vm1, %v246_v45 }
  0xb7   : > { %493 = shalt.err (!%p490_p13)
}
  0xb8   : > { %371 = dma.vmem_to_hbm [thread:$0]  (%p619_p9), %s269_s16, 32, %s271_s18, %s254_s12  }
  0xb9 PF: > { %s282_s15 = sand.u32 1, %s528_s9   ;;  %p378_p0 = pnand %p357_p12, %p626_p11 }
  0xba   : > { %s283_s30 = scalar_lea.sflag [#allocation4], %s282_s15 }
  0xbb   : > { %p379_p1 = pneg %p378_p0 }
  0xbd   : > { %523 = dma.done.wait (%p379_p1), %s283_s30, 32  }
  0xbe   : > { %525 = vsyncadd (%p379_p1), %s283_s30, 4294967264  ;;  %s18_s14 = sadd.s32 1, %s548_s14   ;;  %s708_s9 = smov %s532_s10 }
  0xbf   : > { %p15_p2 = scmp.ge.s32.totalorder %s18_s14, 4   ;;  %s709_s10 = smov %s536_s11 }
  0xc0   : > { %s710_s11 = smov %s624_s23  ;;  %s711_s12 = smov %s544_s13 }
  0xc1   : > { %s712_s13 = smov %s714_s17  ;;  %17 = sbr.rel (!%p15_p2) target bundleno = 6 (0x6), region = 73 }
  0xc6   :  { %289 = vsyncpa [#allocation3], 1 }
  0xc7   :  { %291 = vsyncpa [#allocation3 + $0x1], 1 }
  0xc8   :  { %292 = vsyncpa [#allocation4], 1 }
  0xc9   :  { %294 = vsyncpa [#allocation4 + $0x1], 1 }

</bundles_post_ra>
